<compile_context>
chip_gen: v5e
topology: v5e:2x2
jax: 0.10.0
libtpu: 0.0.40
codegen_flags: <defaults>
</compile_context>

<pallas_src>
import math
from functools import partial

import jax
import jax.numpy as jnp
from jax.experimental import pallas as pl
from jax.experimental.pallas import tpu as pltpu

# Explicit scoped-VMEM budget.  With bf16 resident weights the double-buffered
# resident footprint at ResMLP scale (D=768) is ~20 MiB, so 48 MiB leaves
# headroom even on v7x's 64 MiB physical VMEM (plenty on v5e/v6e's 128 MiB).
_VMEM_LIMIT = 48 * 1024 * 1024
_WTA_BISECT_ITERS = 32            # value-space bisection trips (f32 resolution)


def _resident(shape):
    """BlockSpec for a 2-D weight/bias that stays resident across the grid."""
    return pl.BlockSpec(shape, lambda i: (0, 0))


# --------------------------------------------------------------------------
# Patch embedding: Conv2d(kernel=stride=patch_size) == per-patch matmul,
# streamed over row tiles of (B*P, C*ps*ps) with the weight resident.
# --------------------------------------------------------------------------
def _patch_embed_kernel(p_ref, w_ref, b_ref, o_ref):
    o_ref[...] = (
        jnp.dot(p_ref[...], w_ref[...], preferred_element_type=jnp.float32)
        + b_ref[...]
    ).astype(o_ref.dtype)


def patch_embed(x, w_conv, b_conv, patch_size):
    # x: (B, C, H, W) NCHW.  w_conv: (D, C, ps, ps), b_conv: (D,)
    B, C, H, W = x.shape
    D = w_conv.shape[0]
    ps = patch_size
    gh, gw = H // ps, W // ps
    P = gh * gw
    # unfold into per-patch rows (pure layout glue, plain JAX)
    xp = x.reshape(B, C, gh, ps, gw, ps)
    xp = jnp.transpose(xp, (0, 2, 4, 1, 3, 5)).reshape(B * P, C * ps * ps)
    xp = xp.astype(jnp.bfloat16)                       # halves the HBM stream
    w_flat = jnp.transpose(w_conv.reshape(D, C * ps * ps)).astype(jnp.bfloat16)

    M, K = xp.shape
    # Mem-bound kernel: 512-row tiles (measured ~85% of HBM roofline) and
    # fewer per-step overheads; the full tile is used when M is small.
    tm = M if M <= 512 else 512
    out = pl.pallas_call(
        _patch_embed_kernel,
        grid=(pl.cdiv(M, tm),),
        out_shape=jax.ShapeDtypeStruct((M, D), jnp.float32),
        in_specs=[
            pl.BlockSpec((tm, K), lambda i: (i, 0)),
            _resident((K, D)),
            _resident((1, D)),
        ],
        out_specs=pl.BlockSpec((tm, D), lambda i: (i, 0)),
        compiler_params=pltpu.CompilerParams(
            dimension_semantics=("parallel",),
            vmem_limit_bytes=_VMEM_LIMIT),
    )(xp, w_flat, b_conv.reshape(1, D))
    return out.reshape(B, P, D)


# --------------------------------------------------------------------------
# Winner-take-all threshold: k-th largest value along the patch axis (axis 1),
# found with a fixed-trip value-space bisection (data-independent cost: one
# broadcast compare + one sublane sum per trip).  lax.top_k / lax.sort have no
# Mosaic lowering, and the previous O(k) iterative-max loop was VALU/XLU-bound.
# --------------------------------------------------------------------------
def _kth_largest_threshold(g, k, n_iters=_WTA_BISECT_ITERS):
    """Per-(batch, lane) k-th largest value of g (TB, P, D) along axis 1.

    Invariant: count(g >= lo) >= k at every step, so the final threshold keeps
    at least k elements (ties at the k-th value kept), matching the previous
    rank-count semantics to f32 bisection resolution.
    """
    lo = jnp.min(g, axis=1, keepdims=True)            # (TB, 1, D)
    hi = jnp.max(g, axis=1, keepdims=True)
    kf = jnp.float32(k)

    def body(_, carry):
        lo, hi = carry
        mid = 0.5 * lo + 0.5 * hi                     # overflow-safe midpoint
        cnt = jnp.sum((g >= mid).astype(jnp.float32), axis=1, keepdims=True)
        ge = cnt >= kf
        return jnp.where(ge, mid, lo), jnp.where(ge, hi, mid)

    lo, _ = jax.lax.fori_loop(0, n_iters, body, (lo, hi), unroll=4)
    return lo


# --------------------------------------------------------------------------
# One MlpBlock: saliency + winner-take-all + token mixing + channel MLP.
# One grid step == one TB-sized batch tile, shape (TB, P, D), D on lanes.
# --------------------------------------------------------------------------
def _mlp_block_kernel(
    x_ref, w_sal_ref, b_sal_ref, w_patch_ref, b_patch_ref,
    a1_ref, b1_ref, gamma_ref, a2_ref, b2_ref,
    w_fc1_ref, b_fc1_ref, w_fc2_ref, b_fc2_ref, beta_ls_ref,
    x_out_ref, lasso_ref, *, k,
):
    x = x_ref[...]                                    # (TB, P, D) f32
    TB, P, D = x.shape
    x_bf = x.astype(jnp.bfloat16)

    # Saliency computed directly in "transposed" orientation (no swapaxes):
    # gT[b, q, d] == g[b, d, q] = sum_p w_sal[q, p] * x[b, p, d] + b_sal[q]
    # Batched einsum with the shared bf16 (P, P) weight broadcast over TB.
    w_sal = jnp.broadcast_to(w_sal_ref[...], (TB, P, P))
    gT = jnp.einsum("bqp,bpd->bqd", w_sal, x_bf,
                    preferred_element_type=jnp.float32) + b_sal_ref[...]

    # TODO(synk): winner_take_all is not defined in the provided source; it is
    # implemented as FBS-style "keep the top-k saliency values along the patch
    # axis (ties kept), zero the rest", i.e. x is multiplied by the gated
    # saliency values (same interpretation as the previous version).
    thr = _kth_largest_threshold(gT, k)               # (TB, 1, D)
    xm = x * jnp.where(gT >= thr, gT, 0.0)            # x * post_mask^T

    xa = a1_ref[...] * xm + b1_ref[...]               # Affine (per-D lane row)

    # Token mixing (Linear over the patch axis), still no transpose:
    w_patch = jnp.broadcast_to(w_patch_ref[...], (TB, P, P))
    xt = jnp.einsum("bqp,bpd->bqd", w_patch, xa.astype(jnp.bfloat16),
                    preferred_element_type=jnp.float32) + b_patch_ref[...]
    x2 = xa + gamma_ref[...] * xt
    x3 = a2_ref[...] * x2 + b2_ref[...]               # post Affine

    # Channel MLP (fc1 -> gelu -> fc2) on a stacked (TB*P, D) tile so the MXU
    # sees M = TB*P rows; weights are bf16, accumulation f32.
    x3_2d = x3.reshape(TB * P, D)
    h = jnp.dot(x3_2d.astype(jnp.bfloat16), w_fc1_ref[...],
                preferred_element_type=jnp.float32) + b_fc1_ref[...]
    h = jax.nn.gelu(h, approximate=True)              # tanh GELU -> EUP slot
    y = jnp.dot(h.astype(jnp.bfloat16), w_fc2_ref[...],
                preferred_element_type=jnp.float32) + b_fc2_ref[...]
    y = y.reshape(TB, P, D)

    x_out_ref[...] = x3 + beta_ls_ref[...] * y

    # Partial of sum(g) for this TB tile, written lane-dense as one (1, 128)
    # row per grid step; reduced in the wrapper.
    s = jnp.reshape(jnp.sum(gT), (1, 1))
    lasso_ref[...] = jnp.broadcast_to(s, lasso_ref.shape)


def _pick_batch_tile(B, max_tb=8):
    """Largest batch tile (<= max_tb) dividing B that still leaves >=2 grid
    steps (so both v7x TensorCores get work); falls back to the largest
    divisor when B is too small for two steps."""
    divisors = [t for t in range(1, min(B, max_tb) + 1) if B % t == 0]
    two_step = [t for t in divisors if B // t >= 2]
    return max(two_step) if two_step else max(divisors)


def mlp_block(x, p, k):
    B, P, D = x.shape
    Hdim = p["w_fc1"].shape[0]
    tb = _pick_batch_tile(B)
    n_steps = B // tb
    bf = jnp.bfloat16

    inputs = (
        x,
        p["w_sal"].astype(bf),
        jnp.broadcast_to(p["b_sal"].reshape(P, 1), (P, D)),      # lane-dense bias
        p["w_patch"].astype(bf),
        jnp.broadcast_to(p["b_patch"].reshape(P, 1), (P, D)),    # lane-dense bias
        p["alpha1"].reshape(1, D), p["beta1"].reshape(1, D),
        p["gamma"].reshape(1, D),
        p["alpha2"].reshape(1, D), p["beta2"].reshape(1, D),
        jnp.transpose(p["w_fc1"]).astype(bf), p["b_fc1"].reshape(1, Hdim),
        jnp.transpose(p["w_fc2"]).astype(bf), p["b_fc2"].reshape(1, D),
        p["beta_ls"].reshape(1, D),
    )
    in_specs = [
        pl.BlockSpec((tb, P, D), lambda i: (i, 0, 0)),   # stream a TB batch tile
        _resident((P, P)), _resident((P, D)),
        _resident((P, P)), _resident((P, D)),
        _resident((1, D)), _resident((1, D)),
        _resident((1, D)),
        _resident((1, D)), _resident((1, D)),
        _resident((D, Hdim)), _resident((1, Hdim)),
        _resident((Hdim, D)), _resident((1, D)),
        _resident((1, D)),
    ]
    x_out, lasso_parts = pl.pallas_call(
        partial(_mlp_block_kernel, k=k),
        grid=(n_steps,),
        out_shape=(
            jax.ShapeDtypeStruct((B, P, D), jnp.float32),
            jax.ShapeDtypeStruct((n_steps, 1, 128), jnp.float32),
        ),
        in_specs=in_specs,
        out_specs=(
            pl.BlockSpec((tb, P, D), lambda i: (i, 0, 0)),
            pl.BlockSpec((None, 1, 128), lambda i: (i, 0, 0)),
        ),
        compiler_params=pltpu.CompilerParams(
            dimension_semantics=("parallel",),
            vmem_limit_bytes=_VMEM_LIMIT),
    )(*inputs)
    # torch.mean(torch.sum(g, dim=-1)) == sum(g) / (B * D)
    lasso = jnp.sum(lasso_parts[:, 0, 0]) / (B * D)
    return x_out, lasso


# --------------------------------------------------------------------------
# Head: Affine -> mean over patches -> Linear classifier.  Classifier output
# is computed into a 128-lane-padded block (lane-dense stores) and sliced in
# the wrapper; batch tile raised to min(B, 128).
# --------------------------------------------------------------------------
def _head_kernel(x_ref, alpha_ref, beta_ref, w_ref, b_ref, o_ref):
    xa = alpha_ref[...] * x_ref[...] + beta_ref[...]            # (TB, P, D)
    m = jnp.mean(xa, axis=1)                                    # (TB, D)
    o_ref[...] = jnp.dot(m.astype(jnp.bfloat16), w_ref[...],
                         preferred_element_type=jnp.float32) + b_ref[...]


def head(x, alpha, beta, w_cls, b_cls):
    B, P, D = x.shape
    n_cls = w_cls.shape[0]
    n_pad = ((n_cls + 127) // 128) * 128
    w_p = jnp.pad(jnp.transpose(w_cls),
                  ((0, 0), (0, n_pad - n_cls))).astype(jnp.bfloat16)
    b_p = jnp.pad(b_cls.reshape(1, n_cls), ((0, 0), (0, n_pad - n_cls)))
    tb = B if B <= 128 else 128
    out = pl.pallas_call(
        _head_kernel,
        grid=(pl.cdiv(B, tb),),
        out_shape=jax.ShapeDtypeStruct((B, n_pad), jnp.float32),
        in_specs=[
            pl.BlockSpec((tb, P, D), lambda i: (i, 0, 0)),
            _resident((1, D)), _resident((1, D)),
            _resident((D, n_pad)),                              # padded classifier
            _resident((1, n_pad)),
        ],
        out_specs=pl.BlockSpec((tb, n_pad), lambda i: (i, 0)),
        compiler_params=pltpu.CompilerParams(
            dimension_semantics=("parallel",),
            vmem_limit_bytes=_VMEM_LIMIT),
    )(x, alpha.reshape(1, D), beta.reshape(1, D), w_p, b_p)
    return out[:, :n_cls]


# --------------------------------------------------------------------------
# Full model
# --------------------------------------------------------------------------
def fbs_resmlp_forward(x, params, patch_size, sparsity_ratio=0.5):
    x = patch_embed(x, params["w_conv"], params["b_conv"], patch_size)
    B, P, D = x.shape
    k = max(1, int(sparsity_ratio * P))
    lasso = jnp.float32(0.0)
    for blk in params["blocks"]:
        # NOTE: matches the previous version (reference resets lasso per block,
        # so only the last block's term is returned).
        lasso = jnp.float32(0.0)
        x, g = mlp_block(x, blk, k)
        lasso = lasso + g
    logits = head(x, params["alpha"], params["beta"],
                  params["w_cls"], params["b_cls"])
    return logits, lasso


def init_params(key, dim, img_size, depth, in_chan, patch_size, n_classes,
                layer_scale=0.5):
    num_patch = (img_size // patch_size) ** 2
    keys = iter(jax.random.split(key, 4 + 5 * depth))

    def w(k_, shape, scale=0.02):
        return scale * jax.random.normal(k_, shape, jnp.float32)

    params = {
        "w_conv": w(next(keys), (dim, in_chan, patch_size, patch_size)),
        "b_conv": jnp.zeros((dim,), jnp.float32),
        "alpha": jnp.ones((dim,), jnp.float32),
        "beta": jnp.zeros((dim,), jnp.float32),
        "w_cls": w(next(keys), (n_classes, dim)),
        "b_cls": jnp.zeros((n_classes,), jnp.float32),
        "blocks": [],
    }
    for _ in range(depth):
        sal_std = math.sqrt(2.0 / num_patch)      # kaiming-normal-ish scale
        blk = {
            "w_sal": sal_std * jax.random.normal(next(keys),
                                                 (num_patch, num_patch),
                                                 jnp.float32),
            "b_sal": jnp.ones((num_patch,), jnp.float32),   # constant_(bias, 1.0)
            "alpha1": jnp.ones((dim,), jnp.float32),
            "beta1": jnp.zeros((dim,), jnp.float32),
            "w_patch": w(next(keys), (num_patch, num_patch)),
            "b_patch": jnp.zeros((num_patch,), jnp.float32),
            "gamma": layer_scale * jnp.ones((dim,), jnp.float32),
            "alpha2": jnp.ones((dim,), jnp.float32),
            "beta2": jnp.zeros((dim,), jnp.float32),
            "w_fc1": w(next(keys), (4 * dim, dim)),
            "b_fc1": jnp.zeros((4 * dim,), jnp.float32),
            "w_fc2": w(next(keys), (dim, 4 * dim)),
            "b_fc2": jnp.zeros((dim,), jnp.float32),
            "beta_ls": layer_scale * jnp.ones((dim,), jnp.float32),
        }
        params["blocks"].append(blk)
    return params


if __name__ == "__main__":
    B, C, IMG, PS = 2, 4, 16, 4       # img 16x16, patch 4 -> num_patch = 16
    DIM, DEPTH, NCLS = 32, 2, 10

    key = jax.random.PRNGKey(0)
    kx, kp = jax.random.split(key)
    x = jax.random.normal(kx, (B, C, IMG, IMG), jnp.float32)
    params = init_params(kp, DIM, IMG, DEPTH, C, PS, NCLS)

    logits, lasso = fbs_resmlp_forward(x, params, PS, sparsity_ratio=0.5)
    jax.block_until_ready((logits, lasso))
    assert logits.shape == (B, NCLS) and lasso.shape == ()
    print("KERNEL_OK")
</pallas_src>

<mosaic_0001>
module attributes {stable_mosaic.version = 11 : i64} {
  func.func @_patch_embed_kernel(%arg0: i32, %arg1: memref<32x64xbf16, #tpu.memory_space<vmem>>, %arg2: memref<64x32xbf16, #tpu.memory_space<vmem>>, %arg3: memref<1x32xf32, #tpu.memory_space<vmem>>, %arg4: memref<32x32xf32, #tpu.memory_space<vmem>>) attributes {dimension_semantics = [#tpu.dimension_semantics<parallel>], iteration_bounds = array<i64: 1>, scalar_prefetch = 0 : i64, scratch_operands = 0 : i64, tpu.core_type = #tpu.core_type<tc>, window_params = [{transform_indices = @transform_0, window_bounds = array<i64: 32, 64>}, {pipeline_mode = #tpu.pipeline_mode<synchronous>, transform_indices = @transform_1, window_bounds = array<i64: 64, 32>}, {pipeline_mode = #tpu.pipeline_mode<synchronous>, transform_indices = @transform_2, window_bounds = array<i64: 1, 32>}, {transform_indices = @transform_3, window_bounds = array<i64: 32, 32>}]} {
    %c0 = arith.constant 0 : index
    %c0_0 = arith.constant 0 : index
    %0 = vector.load %arg1[%c0, %c0_0] : memref<32x64xbf16, #tpu.memory_space<vmem>>, vector<32x64xbf16>
    %c0_1 = arith.constant 0 : index
    %c0_2 = arith.constant 0 : index
    %1 = vector.load %arg2[%c0_1, %c0_2] : memref<64x32xbf16, #tpu.memory_space<vmem>>, vector<64x32xbf16>
    %cst = arith.constant dense<0.000000e+00> : vector<32x32xf32>
    %2 = tpu.matmul %0, %1, %cst {dimension_numbers = #tpu.dot_dimension_numbers<[1], [0], [0], [1], [0, 0, 1, 1], [], []>} : vector<32x64xbf16>, vector<64x32xbf16>, vector<32x32xf32> -> vector<32x32xf32>
    %c0_3 = arith.constant 0 : index
    %c0_4 = arith.constant 0 : index
    %3 = vector.load %arg3[%c0_3, %c0_4] : memref<1x32xf32, #tpu.memory_space<vmem>>, vector<1x32xf32>
    %4 = vector.broadcast %3 : vector<1x32xf32> to vector<32x32xf32>
    %5 = arith.addf %2, %4 : vector<32x32xf32>
    %c0_5 = arith.constant 0 : index
    %c0_6 = arith.constant 0 : index
    %6 = vector.load %arg4[%c0_5, %c0_6] : memref<32x32xf32, #tpu.memory_space<vmem>>, vector<32x32xf32>
    tpu.vector_store %arg4[%c0_5, %c0_6], %5 {strides = array<i32>} : memref<32x32xf32, #tpu.memory_space<vmem>>, vector<32x32xf32>,
    return
  }
  func.func @transform_0(%arg0: i32) -> (i32, i32) {
    %c0_i32 = arith.constant 0 : i32
    %c0_i32_0 = arith.constant 0 : i32
    return %arg0, %c0_i32 : i32, i32
  }
  func.func @transform_1(%arg0: i32) -> (i32, i32) {
    %c0_i32 = arith.constant 0 : i32
    %c0_i32_0 = arith.constant 0 : i32
    %c0_i32_1 = arith.constant 0 : i32
    return %c0_i32, %c0_i32_0 : i32, i32
  }
  func.func @transform_2(%arg0: i32) -> (i32, i32) {
    %c0_i32 = arith.constant 0 : i32
    %c0_i32_0 = arith.constant 0 : i32
    %c0_i32_1 = arith.constant 0 : i32
    return %c0_i32, %c0_i32_0 : i32, i32
  }
  func.func @transform_3(%arg0: i32) -> (i32, i32) {
    %c0_i32 = arith.constant 0 : i32
    %c0_i32_0 = arith.constant 0 : i32
    return %arg0, %c0_i32 : i32, i32
  }
}

</mosaic_0001>

<bundles_post_ra>
// kernel: tpu_custom_call.1
= control target key start
LH: loop header
LB: loop body
LE: loop exit
PB: predicated region body
PF: predicated region fallthrough
CT: control target
= control target key end

     0   :  { %s232_s0 = inlined_call_operand.vmem [shape: bf16[32,64], index: 0, kind: input, shape index: {}]   ;;  %s233_s1 = inlined_call_operand.vmem [shape: bf16[64,32], index: 1, kind: input, shape index: {}]   ;;  %s234_s2 = inlined_call_operand.vmem [shape: f32[1,32], index: 2, kind: input, shape index: {}]   ;;  %s235_s3 = inlined_call_operand.hbm [shape: f32[32,32], index: 3, kind: output, shape index: {}]  }
   0x1   :  { %v146_v0 = vld [vmem:[%s233_s1 + $0x18] sm:$0xff]  ;;  %v145_v1 = vld [vmem:[%s233_s1 + $0x10] sm:$0xff] }
   0x2   :  { %77 = vmatpush.bf16.msra.mxu0 %v146_v0  ;;  %147 = vmatpush.bf16.msra.mxu1 %v146_v0 }
   0x3   :  { %8 = vsyncpa [#allocation3], 0  ;;  %v144_v2 = vld [vmem:[%s233_s1 + $0x8] sm:$0xff]  ;;  %v143_v3 = vld [vmem:[%s233_s1] sm:$0xff]  ;;  %vm66_vm0 = vcmask 523264   ;;  %vm92_vm1 = vcmask 261120  }
   0x4   :  { %v141_v4 = vld [vmem:[%s232_s0] sm:$0xff]  ;;  %v142_v5 = vld [vmem:[%s232_s0 + $0x8] sm:$0xff]  ;;  %s181_s1 = smov [#allocation2]   ;;  %s103_s28 = sshll.u32 %s235_s3, 4  ;;  %s104_s28 = int_to_ptr.hbm [resolvable:$true] %s103_s28 }
   0x5   :  { %v154_v6 = vld [vmem:[%s234_s2] ss:$0 sm:$0xff]  ;;  %s101_s0 = sshll.u32 %s181_s1, 4  ;;  %s182_s2 = smov 128   ;;  %s102_s0 = int_to_ptr.vmem [resolvable:$true] %s101_s0 }
   0x6   :  { %78 = vmatpush.bf16.msra.mxu0 %v145_v1  ;;  %148 = vmatpush.bf16.msra.mxu1 %v145_v1  ;;  %s183_s29 = smov 8  }
   0xa   :  { %79 = vmatpush.bf16.msra.mxu0 %v144_v2  ;;  %149 = vmatpush.bf16.msra.mxu1 %v144_v2 }
   0xe   :  { %80 = vmatpush.bf16.msra.mxu0 %v143_v3  ;;  %150 = vmatpush.bf16.msra.mxu1 %v143_v3 }
  0x11   :  { %139 = vmatmul.msk.bf16.vlgmr.msra.gmra.mxu0 %vm66_vm0, %v141_v4  ;;  %140 = vmatmul.msk.bf16.vlgmr.msra.gmra.mxu1 %vm66_vm0, %v142_v5 }
  0x8e   :  { %v82_v7 = vpop.f32.mrf.mxu0  ;;  %v87_v8 = vpop.f32.mrf.mxu1 }
  0x8f   :  { %v83_v9 = vadd.f32 %v154_v6, %v82_v7  ;;  %v88_v10 = vadd.f32 %v154_v6, %v87_v8 }
  0x91   :  { %93 = vst.msk [vmem:[#allocation2] sm:$0xff] %vm92_vm1, %v83_v9 }
  0x92   :  { %95 = vst.msk [vmem:[#allocation2 + $0x10] sm:$0xff] %vm92_vm1, %v88_v10 }
  0x96   :  { %v84_v11 = vpop.f32.mrf.mxu0  ;;  %v89_v12 = vpop.f32.mrf.mxu1 }
  0x97   :  { %v85_v13 = vadd.f32 %v154_v6, %v84_v11  ;;  %v90_v14 = vadd.f32 %v154_v6, %v89_v12 }
  0x99   :  { %94 = vst.msk [vmem:[#allocation2 + $0x8] sm:$0xff] %vm92_vm1, %v85_v13 }
  0x9a   :  { %96 = vst.msk [vmem:[#allocation2 + $0x18] sm:$0xff] %vm92_vm1, %v90_v14 }
  0x9b   :  { %109 = dma.vmem_to_hbm [thread:$0]  %s102_s0, 512, %s104_s28, [#allocation3], %s182_s2, %s182_s2, %s183_s29  }
  0x9c   :  { %179 = dma.done.wait [#allocation3], 512  }
  0x9d   :  { %180 = vsyncadd [#allocation3], 4294966784 }
  0x9e   :  { %114 = vsyncpa [#allocation3], 1 }

</bundles_post_ra>
